<compile_context>
chip_gen: v7x
topology: tpu7x:2x2x1
jax: 0.10.0
libtpu: 0.0.40
codegen_flags: <defaults>
</compile_context>

<pallas_src>
import jax
import jax.numpy as jnp
from jax.experimental import pallas as pl
from jax.experimental.pallas import tpu as pltpu


def critic_kernel(state_ref, act_ref, w1s_ref, w1a_ref, b1_ref,
                  w2_ref, b2_ref, wq_ref, bq_ref, o_ref):
    # Inputs arrive f32; cast activations to bf16 for the MXU, accumulate f32.
    s = state_ref[...].astype(jnp.bfloat16)                       # (TB, obs)
    a = act_ref[...].astype(jnp.bfloat16)                         # (TB, act)

    # fc1: split-weight matmul replaces the external concat.
    h1 = (jnp.dot(s, w1s_ref[...], preferred_element_type=jnp.float32)
          + jnp.dot(a, w1a_ref[...], preferred_element_type=jnp.float32)
          + b1_ref[...])                                          # (TB, 256) f32
    h1 = jnp.maximum(h1, 0.0).astype(jnp.bfloat16)

    # fc2
    h2 = jnp.dot(h1, w2_ref[...], preferred_element_type=jnp.float32) + b2_ref[...]
    h2 = jnp.maximum(h2, 0.0)                                     # (TB, 256) f32

    # q head: N=1 matmul replaced by VPU mul + cross-lane reduce (XLU),
    # wq stored as (1, 256) f32, bq is a scalar read from SMEM.
    q = jnp.sum(h2 * wq_ref[...], axis=-1, keepdims=True) + bq_ref[0, 0]
    o_ref[...] = q.astype(o_ref.dtype)                            # (TB, 1)


def critic_forward(state, actions, params):
    """state: (B, obs_dim), actions: (B, n_actions) -> q: (B, 1)."""
    w1s, w1a, b1, w2, b2, wq, bq = params
    B, obs_dim = state.shape
    act_dim = actions.shape[1]
    fc1_dims = w1s.shape[1]
    fc2_dims = w2.shape[1]

    # Batch tiling: one full tile for small B, 128-row tiles otherwise
    # (pad the ragged tail with zeros; rows are independent so this is safe).
    TB = B if B <= 128 else 128
    padded_B = pl.cdiv(B, TB) * TB
    if padded_B != B:
        pad = padded_B - B
        state = jnp.pad(state, ((0, pad), (0, 0)))
        actions = jnp.pad(actions, ((0, pad), (0, 0)))
    num_tiles = padded_B // TB

    # Weights / biases: full-array blocks with constant index_maps so they are
    # DMA'd once and stay VMEM-resident across the batch grid.
    def resident(arr):
        return pl.BlockSpec(arr.shape, lambda i, _nd=arr.ndim: (0,) * _nd)

    flops = 2 * B * ((obs_dim + act_dim) * fc1_dims + fc1_dims * fc2_dims + fc2_dims)
    bytes_accessed = int(
        state.size * 4 + actions.size * 4 + padded_B * 4
        + sum(int(a.size) * a.dtype.itemsize for a in (w1s, w1a, b1, w2, b2, wq, bq))
    )

    out = pl.pallas_call(
        critic_kernel,
        out_shape=jax.ShapeDtypeStruct((padded_B, 1), jnp.float32),
        grid=(num_tiles,),
        in_specs=[
            pl.BlockSpec((TB, obs_dim), lambda i: (i, 0)),        # state tile
            pl.BlockSpec((TB, act_dim), lambda i: (i, 0)),        # actions tile
            resident(w1s), resident(w1a), resident(b1),
            resident(w2), resident(b2), resident(wq),
            pl.BlockSpec(memory_space=pltpu.MemorySpace.SMEM),    # bq scalar
        ],
        out_specs=pl.BlockSpec((TB, 1), lambda i: (i, 0)),
        compiler_params=pltpu.CompilerParams(
            dimension_semantics=("parallel",),    # shard batch over v7x's 2 TCs
            vmem_limit_bytes=8 << 20,             # kernel needs well under 1 MiB
        ),
        cost_estimate=pl.CostEstimate(
            flops=flops, transcendentals=0, bytes_accessed=bytes_accessed),
    )(state, actions, w1s, w1a, b1, w2, b2, wq, bq)

    return out[:B]


def init_params(key, obs_dim, n_actions, fc1_dims=256, fc2_dims=256):
    """PyTorch Linear-style uniform init; weights stored (in, out).

    fc1 weight is pre-split into state/actions parts (bf16), q-head weight is
    stored as (1, fc2) f32 for the VPU reduction path, bq as (1,1) f32.
    """
    ks = jax.random.split(key, 6)
    in_dim = obs_dim + n_actions

    def lin(kw, kb, fan_in, fan_out):
        bound = 1.0 / jnp.sqrt(fan_in)
        w = jax.random.uniform(kw, (fan_in, fan_out), jnp.float32, -bound, bound)
        b = jax.random.uniform(kb, (1, fan_out), jnp.float32, -bound, bound)
        return w, b

    w1, b1 = lin(ks[0], ks[1], in_dim, fc1_dims)
    w2, b2 = lin(ks[2], ks[3], fc1_dims, fc2_dims)
    wq, bq = lin(ks[4], ks[5], fc2_dims, 1)

    w1s = w1[:obs_dim].astype(jnp.bfloat16)       # (obs_dim, fc1)
    w1a = w1[obs_dim:].astype(jnp.bfloat16)       # (n_actions, fc1)
    w2 = w2.astype(jnp.bfloat16)                  # (fc1, fc2)
    wq = wq.T                                     # (1, fc2) f32
    bq = bq.reshape(1, 1)                         # (1, 1) f32
    return (w1s, w1a, b1, w2, b2, wq, bq)


def critic_reference(state, actions, params):
    """Pure f32 reference with the original (concat -> 3 Linear) structure."""
    w1s, w1a, b1, w2, b2, wq, bq = params
    w1 = jnp.concatenate([w1s, w1a], axis=0).astype(jnp.float32)
    x = jnp.concatenate([state, actions], axis=1)
    x = jnp.maximum(x @ w1 + b1, 0.0)
    x = jnp.maximum(x @ w2.astype(jnp.float32) + b2, 0.0)
    return x @ wq.T + bq


if __name__ == "__main__":
    key = jax.random.PRNGKey(0)
    k_s, k_a, k_p = jax.random.split(key, 3)

    batch, obs_dim, n_actions = 8, 8, 4           # n_inputs = (8,), n_actions = 4
    fc1_dims, fc2_dims = 256, 256

    state = jax.random.normal(k_s, (batch, obs_dim), jnp.float32)
    actions = jax.random.normal(k_a, (batch, n_actions), jnp.float32)
    params = init_params(k_p, obs_dim, n_actions, fc1_dims, fc2_dims)

    q = critic_forward(state, actions, params)
    q = jax.block_until_ready(q)

    q_ref = critic_reference(state, actions, params)
    assert q.shape == (batch, 1), q.shape
    # bf16 matmuls with f32 accumulation: allow small numerical slack vs f32 ref.
    assert jnp.allclose(q, q_ref, atol=2e-2, rtol=2e-2), (q, q_ref)

    print("KERNEL_OK")
</pallas_src>

<mosaic_0001>
module attributes {stable_mosaic.version = 11 : i64} {
  func.func @critic_kernel(%arg0: i32, %arg1: memref<8x8xf32, #tpu.memory_space<vmem>>, %arg2: memref<8x4xf32, #tpu.memory_space<vmem>>, %arg3: memref<8x256xbf16, #tpu.memory_space<vmem>>, %arg4: memref<4x256xbf16, #tpu.memory_space<vmem>>, %arg5: memref<1x256xf32, #tpu.memory_space<vmem>>, %arg6: memref<256x256xbf16, #tpu.memory_space<vmem>>, %arg7: memref<1x256xf32, #tpu.memory_space<vmem>>, %arg8: memref<1x256xf32, #tpu.memory_space<vmem>>, %arg9: memref<1x1xf32, #tpu.memory_space<smem>>, %arg10: memref<8x1xf32, #tpu.memory_space<vmem>>) attributes {dimension_semantics = [#tpu.dimension_semantics<parallel>], iteration_bounds = array<i64: 1>, scalar_prefetch = 0 : i64, scratch_operands = 0 : i64, tpu.core_type = #tpu.core_type<tc>, window_params = [{transform_indices = @transform_0, window_bounds = array<i64: 8, 8>}, {transform_indices = @transform_1, window_bounds = array<i64: 8, 4>}, {pipeline_mode = #tpu.pipeline_mode<synchronous>, transform_indices = @transform_2, window_bounds = array<i64: 8, 256>}, {pipeline_mode = #tpu.pipeline_mode<synchronous>, transform_indices = @transform_3, window_bounds = array<i64: 4, 256>}, {pipeline_mode = #tpu.pipeline_mode<synchronous>, transform_indices = @transform_4, window_bounds = array<i64: 1, 256>}, {pipeline_mode = #tpu.pipeline_mode<synchronous>, transform_indices = @transform_5, window_bounds = array<i64: 256, 256>}, {pipeline_mode = #tpu.pipeline_mode<synchronous>, transform_indices = @transform_6, window_bounds = array<i64: 1, 256>}, {pipeline_mode = #tpu.pipeline_mode<synchronous>, transform_indices = @transform_7, window_bounds = array<i64: 1, 256>}, {transform_indices = @transform_8, window_bounds = array<i64: 1, 1>}, {transform_indices = @transform_9, window_bounds = array<i64: 8, 1>}]} {
    %c0 = arith.constant 0 : index
    %c0_0 = arith.constant 0 : index
    %0 = vector.load %arg1[%c0, %c0_0] : memref<8x8xf32, #tpu.memory_space<vmem>>, vector<8x8xf32>
    %1 = arith.truncf %0 : vector<8x8xf32> to vector<8x8xbf16>
    %c0_1 = arith.constant 0 : index
    %c0_2 = arith.constant 0 : index
    %2 = vector.load %arg2[%c0_1, %c0_2] : memref<8x4xf32, #tpu.memory_space<vmem>>, vector<8x4xf32>
    %3 = arith.truncf %2 : vector<8x4xf32> to vector<8x4xbf16>
    %c0_3 = arith.constant 0 : index
    %c0_4 = arith.constant 0 : index
    %4 = vector.load %arg3[%c0_3, %c0_4] : memref<8x256xbf16, #tpu.memory_space<vmem>>, vector<8x256xbf16>
    %cst = arith.constant dense<0.000000e+00> : vector<8x256xf32>
    %5 = tpu.matmul %1, %4, %cst {dimension_numbers = #tpu.dot_dimension_numbers<[1], [0], [0], [1], [0, 0, 1, 1], [], []>} : vector<8x8xbf16>, vector<8x256xbf16>, vector<8x256xf32> -> vector<8x256xf32>
    %c0_5 = arith.constant 0 : index
    %c0_6 = arith.constant 0 : index
    %6 = vector.load %arg4[%c0_5, %c0_6] : memref<4x256xbf16, #tpu.memory_space<vmem>>, vector<4x256xbf16>
    %cst_7 = arith.constant dense<0.000000e+00> : vector<8x256xf32>
    %7 = tpu.matmul %3, %6, %cst_7 {dimension_numbers = #tpu.dot_dimension_numbers<[1], [0], [0], [1], [0, 0, 1, 1], [], []>} : vector<8x4xbf16>, vector<4x256xbf16>, vector<8x256xf32> -> vector<8x256xf32>
    %8 = arith.addf %5, %7 : vector<8x256xf32>
    %c0_8 = arith.constant 0 : index
    %c0_9 = arith.constant 0 : index
    %9 = vector.load %arg5[%c0_8, %c0_9] : memref<1x256xf32, #tpu.memory_space<vmem>>, vector<1x256xf32>
    %10 = vector.broadcast %9 : vector<1x256xf32> to vector<8x256xf32>
    %11 = arith.addf %8, %10 : vector<8x256xf32>
    %cst_10 = arith.constant 0.000000e+00 : f32
    %12 = vector.broadcast %cst_10 : f32 to vector<8x256xf32>
    %13 = arith.maximumf %11, %12 : vector<8x256xf32>
    %14 = arith.truncf %13 : vector<8x256xf32> to vector<8x256xbf16>
    %c0_11 = arith.constant 0 : index
    %c0_12 = arith.constant 0 : index
    %15 = vector.load %arg6[%c0_11, %c0_12] : memref<256x256xbf16, #tpu.memory_space<vmem>>, vector<256x256xbf16>
    %cst_13 = arith.constant dense<0.000000e+00> : vector<8x256xf32>
    %16 = tpu.matmul %14, %15, %cst_13 {dimension_numbers = #tpu.dot_dimension_numbers<[1], [0], [0], [1], [0, 0, 1, 1], [], []>} : vector<8x256xbf16>, vector<256x256xbf16>, vector<8x256xf32> -> vector<8x256xf32>
    %c0_14 = arith.constant 0 : index
    %c0_15 = arith.constant 0 : index
    %17 = vector.load %arg7[%c0_14, %c0_15] : memref<1x256xf32, #tpu.memory_space<vmem>>, vector<1x256xf32>
    %18 = vector.broadcast %17 : vector<1x256xf32> to vector<8x256xf32>
    %19 = arith.addf %16, %18 : vector<8x256xf32>
    %cst_16 = arith.constant 0.000000e+00 : f32
    %20 = vector.broadcast %cst_16 : f32 to vector<8x256xf32>
    %21 = arith.maximumf %19, %20 : vector<8x256xf32>
    %c0_17 = arith.constant 0 : index
    %c0_18 = arith.constant 0 : index
    %22 = vector.load %arg8[%c0_17, %c0_18] : memref<1x256xf32, #tpu.memory_space<vmem>>, vector<1x256xf32>
    %23 = vector.broadcast %22 : vector<1x256xf32> to vector<8x256xf32>
    %24 = arith.mulf %21, %23 : vector<8x256xf32>
    %cst_19 = arith.constant dense<0.000000e+00> : vector<8xf32>
    %25 = vector.multi_reduction <add>, %24, %cst_19 [1] : vector<8x256xf32> to vector<8xf32>
    %26 = vector.shape_cast %25 : vector<8xf32> to vector<8x1xf32>
    %c0_20 = arith.constant 0 : index
    %c0_21 = arith.constant 0 : index
    %27 = memref.load %arg9[%c0_20, %c0_21] : memref<1x1xf32, #tpu.memory_space<smem>>
    %28 = vector.broadcast %27 : f32 to vector<8x1xf32>
    %29 = arith.addf %26, %28 : vector<8x1xf32>
    %c0_22 = arith.constant 0 : index
    %c0_23 = arith.constant 0 : index
    %30 = vector.load %arg10[%c0_22, %c0_23] : memref<8x1xf32, #tpu.memory_space<vmem>>, vector<8x1xf32>
    tpu.vector_store %arg10[%c0_22, %c0_23], %29 {strides = array<i32>} : memref<8x1xf32, #tpu.memory_space<vmem>>, vector<8x1xf32>,
    return
  }
  func.func @transform_0(%arg0: i32) -> (i32, i32) {
    %c0_i32 = arith.constant 0 : i32
    %c0_i32_0 = arith.constant 0 : i32
    return %arg0, %c0_i32 : i32, i32
  }
  func.func @transform_1(%arg0: i32) -> (i32, i32) {
    %c0_i32 = arith.constant 0 : i32
    %c0_i32_0 = arith.constant 0 : i32
    return %arg0, %c0_i32 : i32, i32
  }
  func.func @transform_2(%arg0: i32) -> (i32, i32) {
    %c0_i32 = arith.constant 0 : i32
    %c0_i32_0 = arith.constant 0 : i32
    %c0_i32_1 = arith.constant 0 : i32
    return %c0_i32, %c0_i32_0 : i32, i32
  }
  func.func @transform_3(%arg0: i32) -> (i32, i32) {
    %c0_i32 = arith.constant 0 : i32
    %c0_i32_0 = arith.constant 0 : i32
    %c0_i32_1 = arith.constant 0 : i32
    return %c0_i32, %c0_i32_0 : i32, i32
  }
  func.func @transform_4(%arg0: i32) -> (i32, i32) {
    %c0_i32 = arith.constant 0 : i32
    %c0_i32_0 = arith.constant 0 : i32
    %c0_i32_1 = arith.constant 0 : i32
    return %c0_i32, %c0_i32_0 : i32, i32
  }
  func.func @transform_5(%arg0: i32) -> (i32, i32) {
    %c0_i32 = arith.constant 0 : i32
    %c0_i32_0 = arith.constant 0 : i32
    %c0_i32_1 = arith.constant 0 : i32
    return %c0_i32, %c0_i32_0 : i32, i32
  }
  func.func @transform_6(%arg0: i32) -> (i32, i32) {
    %c0_i32 = arith.constant 0 : i32
    %c0_i32_0 = arith.constant 0 : i32
    %c0_i32_1 = arith.constant 0 : i32
    return %c0_i32, %c0_i32_0 : i32, i32
  }
  func.func @transform_7(%arg0: i32) -> (i32, i32) {
    %c0_i32 = arith.constant 0 : i32
    %c0_i32_0 = arith.constant 0 : i32
    %c0_i32_1 = arith.constant 0 : i32
    return %c0_i32, %c0_i32_0 : i32, i32
  }
  func.func @transform_8(%arg0: i32) -> (i32, i32) {
    %c0_i32 = arith.constant 0 : i32
    %c0_i32_0 = arith.constant 0 : i32
    %c0_i32_1 = arith.constant 0 : i32
    return %c0_i32, %c0_i32_0 : i32, i32
  }
  func.func @transform_9(%arg0: i32) -> (i32, i32) {
    %c0_i32 = arith.constant 0 : i32
    %c0_i32_0 = arith.constant 0 : i32
    return %arg0, %c0_i32 : i32, i32
  }
}

</mosaic_0001>

<bundles_post_ra>
// kernel: tpu_custom_call.1
= control target key start
LH: loop header
LB: loop body
LE: loop exit
PB: predicated region body
PF: predicated region fallthrough
CT: control target
= control target key end

     0   :  { %15 = vsyncpa [#allocation4], 0  ;;  %s581_s30 = smov [#allocation3]   ;;  %s674_s0 = inlined_call_operand.vmem [shape: f32[8,8], index: 0, kind: input, shape index: {}]   ;;  %s675_s1 = inlined_call_operand.vmem [shape: f32[8,4], index: 1, kind: input, shape index: {}]   ;;  %s676_s2 = inlined_call_operand.vmem [shape: bf16[8,256], index: 2, kind: input, shape index: {}]   ;;  %s677_s3 = inlined_call_operand.vmem [shape: bf16[4,256], index: 3, kind: input, shape index: {}]   ;;  %s678_s4 = inlined_call_operand.vmem [shape: f32[1,256], index: 4, kind: input, shape index: {}]   ;;  %s679_s5 = inlined_call_operand.hbm [shape: bf16[256,256], index: 5, kind: input, shape index: {}]   ;;  %s680_s6 = inlined_call_operand.vmem [shape: f32[1,256], index: 6, kind: input, shape index: {}]   ;;  %s681_s7 = inlined_call_operand.vmem [shape: f32[1,256], index: 7, kind: input, shape index: {}]   ;;  %s682_s8 = inlined_call_operand.<no memory space> [shape: f32[1,1], index: 8, kind: input, shape index: {}]   ;;  %s683_s9 = inlined_call_operand.vmem [shape: f32[8,1], index: 9, kind: output, shape index: {}]  }
   0x1   :  { %s31_s10 = sshll.u32 %s581_s30, 4  ;;  %s557_s13 = scalar_lea.hbm %s679_s5, 4096  ;;  %s32_s10 = int_to_ptr.vmem [resolvable:$true] %s31_s10 }
   0x2   :  { %p558_p0 = scmp.ne.s32.totalorder %s679_s5, %s557_s13  ;;  %p561_p1 = scmp.lt.u32.totalorder %s557_s13, %s679_s5 }
   0x4   :  { %p563_p2 = pnand %p561_p1, %p558_p0 }
   0x6   :  { %566 = shalt.err (!%p563_p2)
}
   0x7   :  { %s567_s18 = scalar_lea.vmem %s32_s10, 4096  ;;  %p572_p4 = scmp.lt.s32.totalorder %s32_s10, %s32_s10 }
   0x8   :  { %p568_p3 = scmp.ne.s32.totalorder %s32_s10, %s567_s18  ;;  %p573_p5 = scmp.lt.s32.totalorder %s567_s18, %s567_s18 }
   0xa   :  { %p574_p6 = por %p573_p5, %p572_p4 }
   0xc   :  { %p575_p7 = pnand %p574_p6, %p568_p3 }
   0xe   :  { %578 = shalt.err (!%p575_p7)
}
   0xf   :  { %s582_s19 = smov 128   ;;  %s583_s20 = smov 8  }
  0x10   :  { %37 = dma.hbm_to_vmem [thread:$0]  %s679_s5, 4096, %s32_s10, [#allocation4], %s582_s19, %s582_s19, %s583_s20  }
  0x11   :  { %579 = dma.done.wait [#allocation4], 4096  }
  0x12   :  { %580 = vsyncadd [#allocation4], 4294963200  ;;  %v584_v0 = vmov 0   ;;  %vm67_vm0 = vcmask 1041408   ;;  %v50_v2 = vld [vmem:[%s675_s1] sm:$0xff]  ;;  %vm124_vm1 = vcmask 1043456   ;;  %v174_v44 = vlaneseq }
  0x13   :  { %106 = vmatprep.mubr.bf16.mxu1 %v584_v0  ;;  %v464_v1 = vld.sshfl [vmem:[%s677_s3] sm:$0x33 pattern:$0x76325410]  ;;  %v509_v8 = vld [vmem:[#allocation3 + $0x4] ss:$8 sps:$4 sm:$0xff]   ;;  %v51_v10 = vpack.c.bf16 %v50_v2, %v50_v2 }
  0x14   :  { %v52_v3 = vld [vmem:[%s676_s2] sm:$0xff]  ;;  %v62_v4 = vcombine.high %v464_v1, %v464_v1  ;;  %v69_v5 = vsel %vm67_vm0, %v464_v1, 0  ;;  %v512_v11 = vld [vmem:[#allocation3 + $0x14] ss:$8 sps:$4 sm:$0xff]   ;;  %vm63_vm2 = vcmask 31744   ;;  %394 = vmatprep.subr.bf16.mxu0 %v509_v8  ;;  %vm120_vm3 = vcmask 64512  }
  0x15   :  { %v468_v6 = vcombine.high %v52_v3, %v52_v3  ;;  %v467_v7 = vcombine.low %v52_v3, %v52_v3  ;;  %v511_v9 = vld [vmem:[#allocation3] ss:$8 sps:$4 sm:$0xff]   ;;  %v514_v13 = vld [vmem:[#allocation3 + $0x10] ss:$8 sps:$4 sm:$0xff]   ;;  %v515_v14 = vld [vmem:[#allocation3 + $0x24] ss:$8 sps:$4 sm:$0xff]  }
  0x16   :  { %465 = vmatprep.subr.msk.bf16.mxu1 %vm67_vm0, %v62_v4  ;;  %395 = vmatpush1.bf16.msra.mxu0 %v511_v9  ;;  %v48_v15 = vld [vmem:[%s674_s0] sm:$0xff]  ;;  %v518_v17 = vld [vmem:[#allocation3 + $0x34] ss:$8 sps:$4 sm:$0xff]   ;;  %v520_v19 = vld [vmem:[#allocation3 + $0x30] ss:$8 sps:$4 sm:$0xff]   ;;  %v175_v45 = vshrl.u32 %v174_v44, 7 }
  0x17   :  { %75 = vmatpush1.bf16.msra.mxu1 %v69_v5  ;;  %v126_v12 = vsel %vm124_vm1, %v467_v7, 0  ;;  %396 = vmatprep.subr.bf16.mxu0 %v512_v11  ;;  %v517_v16 = vld [vmem:[#allocation3 + $0x20] ss:$8 sps:$4 sm:$0xff]   ;;  %v49_v18 = vpack.c.bf16 %v48_v15, %v48_v15  ;;  %v521_v20 = vld [vmem:[#allocation3 + $0x44] ss:$8 sps:$4 sm:$0xff]   ;;  %vm457_vm4 = vcmask 7168  }
  0x18   :  { %469 = vmatprep.subr.msk.bf16.mxu1 %vm124_vm1, %v468_v6  ;;  %v523_v21 = vld [vmem:[#allocation3 + $0x40] ss:$8 sps:$4 sm:$0xff]   ;;  %v524_v22 = vld [vmem:[#allocation3 + $0x54] ss:$8 sps:$4 sm:$0xff]   ;;  %v526_v23 = vld [vmem:[#allocation3 + $0x50] ss:$8 sps:$4 sm:$0xff]  }
  0x19   :  { %v527_v24 = vld [vmem:[#allocation3 + $0x64] ss:$8 sps:$4 sm:$0xff]   ;;  %v529_v25 = vld [vmem:[#allocation3 + $0x60] ss:$8 sps:$4 sm:$0xff]   ;;  %v530_v26 = vld [vmem:[#allocation3 + $0x74] ss:$8 sps:$4 sm:$0xff]  }
  0x1a   :  { %466 = vmatmul.mubr.msk.bf16.vlgmr.msra.gmra.mrb[0].mxu1 %vm63_vm2, %v51_v10  ;;  %397 = vmatpush1.bf16.msra.mxu0 %v514_v13  ;;  %v532_v27 = vld [vmem:[#allocation3 + $0x70] ss:$8 sps:$4 sm:$0xff]   ;;  %v533_v28 = vld [vmem:[#allocation3 + $0x84] ss:$8 sps:$4 sm:$0xff]   ;;  %v535_v29 = vld [vmem:[#allocation3 + $0x80] ss:$8 sps:$4 sm:$0xff]  }
  0x1b   :  { %132 = vmatpush1.bf16.msra.mxu1 %v126_v12  ;;  %163 = vmatprep.mubr.bf16.mxu1 %v584_v0  ;;  %v536_v30 = vld [vmem:[#allocation3 + $0x94] ss:$8 sps:$4 sm:$0xff]   ;;  %v538_v31 = vld [vmem:[#allocation3 + $0x90] ss:$8 sps:$4 sm:$0xff]   ;;  %v539_v32 = vld [vmem:[#allocation3 + $0xa4] ss:$8 sps:$4 sm:$0xff]  }
  0x1c   :  { %398 = vmatprep.subr.bf16.mxu0 %v515_v14  ;;  %v541_v33 = vld [vmem:[#allocation3 + $0xa0] ss:$8 sps:$4 sm:$0xff]   ;;  %v542_v34 = vld [vmem:[#allocation3 + $0xb4] ss:$8 sps:$4 sm:$0xff]   ;;  %v544_v35 = vld [vmem:[#allocation3 + $0xb0] ss:$8 sps:$4 sm:$0xff]  }
  0x1d   :  { %v545_v36 = vld [vmem:[#allocation3 + $0xc4] ss:$8 sps:$4 sm:$0xff]   ;;  %v547_v37 = vld [vmem:[#allocation3 + $0xc0] ss:$8 sps:$4 sm:$0xff]   ;;  %v548_v38 = vld [vmem:[#allocation3 + $0xd4] ss:$8 sps:$4 sm:$0xff]  }
  0x1e   :  { %399 = vmatpush1.bf16.msra.mxu0 %v517_v16  ;;  %v550_v39 = vld [vmem:[#allocation3 + $0xd0] ss:$8 sps:$4 sm:$0xff]   ;;  %v551_v40 = vld [vmem:[#allocation3 + $0xe4] ss:$8 sps:$4 sm:$0xff]   ;;  %v553_v41 = vld [vmem:[#allocation3 + $0xe0] ss:$8 sps:$4 sm:$0xff]  }
  0x1f   :  { %400 = vmatprep.subr.bf16.mxu0 %v518_v17  ;;  %v554_v42 = vld [vmem:[#allocation3 + $0xf4] ss:$8 sps:$4 sm:$0xff]   ;;  %v556_v43 = vld [vmem:[#allocation3 + $0xf0] ss:$8 sps:$4 sm:$0xff]   ;;  %v176_v50 = vsub.s32 0, %v175_v45  ;;  %v180_v52 = vsub.s32 1, %v175_v45 }
  0x20   :  { %v172_v51 = vld [vmem:[%s678_s4] sm:$0x3] }
  0x21   :  { %v177_v53 = vrot.slane %v172_v51, %v176_v50  ;;  %v181_v55 = vrot.slane %v172_v51, %v180_v52  ;;  %v222_v3 = vld [vmem:[%s680_s6] sm:$0x3] }
  0x22   :  { %470 = vmatmul.mubr.msk.bf16.vlgmr.msra.gmra.mrb[4].mxu1 %vm120_vm3, %v49_v18  ;;  %401 = vmatpush1.bf16.msra.mxu0 %v520_v19  ;;  %v227_v4 = vrot.slane %v222_v3, %v176_v50  ;;  %v231_v5 = vrot.slane %v222_v3, %v180_v52  ;;  %v437_v6 = vld [vmem:[%s681_s7] sm:$0x3] }
  0x23   :  { %402 = vmatprep.subr.bf16.mxu0 %v521_v20  ;;  %v442_v10 = vrot.slane %v437_v6, %v176_v50  ;;  %v446_v13 = vrot.slane %v437_v6, %v180_v52  ;;  %v455_v20 = vstv %s682_s8 }
  0x26   :  { %403 = vmatpush1.bf16.msra.mxu0 %v523_v21 }
  0x27   :  { %404 = vmatprep.subr.bf16.mxu0 %v524_v22 }
  0x2a   :  { %405 = vmatpush1.bf16.msra.mxu0 %v526_v23 }
  0x2b   :  { %406 = vmatprep.subr.bf16.mxu0 %v527_v24 }
  0x2e   :  { %407 = vmatpush1.bf16.msra.mxu0 %v529_v25 }
  0x2f   :  { %408 = vmatprep.subr.bf16.mxu0 %v530_v26 }
  0x32   :  { %409 = vmatpush1.bf16.msra.mxu0 %v532_v27 }
  0x33   :  { %410 = vmatprep.subr.bf16.mxu0 %v533_v28 }
  0x36   :  { %411 = vmatpush1.bf16.msra.mxu0 %v535_v29 }
  0x37   :  { %412 = vmatprep.subr.bf16.mxu0 %v536_v30 }
  0x3a   :  { %413 = vmatpush1.bf16.msra.mxu0 %v538_v31 }
  0x3b   :  { %414 = vmatprep.subr.bf16.mxu0 %v539_v32 }
  0x3e   :  { %415 = vmatpush1.bf16.msra.mxu0 %v541_v33 }
  0x3f   :  { %416 = vmatprep.subr.bf16.mxu0 %v542_v34 }
  0x42   :  { %417 = vmatpush1.bf16.msra.mxu0 %v544_v35 }
  0x43   :  { %418 = vmatprep.subr.bf16.mxu0 %v545_v36 }
  0x46   :  { %419 = vmatpush1.bf16.msra.mxu0 %v547_v37 }
  0x47   :  { %420 = vmatprep.subr.bf16.mxu0 %v548_v38 }
  0x4a   :  { %421 = vmatpush1.bf16.msra.mxu0 %v550_v39 }
  0x4b   :  { %422 = vmatprep.subr.bf16.mxu0 %v551_v40 }
  0x4e   :  { %423 = vmatpush1.bf16.msra.mxu0 %v553_v41 }
  0x4f   :  { %424 = vmatprep.subr.bf16.mxu0 %v554_v42 }
  0x52   :  { %425 = vmatpush1.bf16.msra.mxu0 %v556_v43 }
  0xed   :  { %v108_v46 = vpop.f32.mrb[0].mxu1 }
  0xee   :  { %v110_v47 = vpop.f32.mrb[1].mxu1 }
  0xef   :  { %v112_v48 = vpop.f32.mrb[2].mxu1 }
  0xf0   :  { %v113_v49 = vpop.f32.mrb[3].mxu1 }
  0xf5   :  { %v165_v54 = vpop.f32.mrb[4].mxu1 }
  0xf6   :  { %v166_v56 = vadd.f32 %v165_v54, %v108_v46  ;;  %v167_v57 = vpop.f32.mrb[5].mxu1 }
  0xf7   :  { %v168_v58 = vadd.f32 %v167_v57, %v110_v47  ;;  %v169_v59 = vpop.f32.mrb[6].mxu1 }
  0xf8   :  { %v184_v60 = vadd.f32 %v177_v53, %v166_v56  ;;  %v170_v61 = vpop.f32.mrb[7].mxu1 }
  0xf9   :  { %v185_v62 = vadd.f32 %v181_v55, %v168_v58 }
  0xfa   :  { %v186_v63 = vmax.f32 %v184_v60, 0.0 }
  0xfb   :  { %v187_v0 = vmax.f32 %v185_v62, 0.0 }
  0xfc   :  { %v188_v2 = vpack.c.bf16 %v186_v63, %v186_v63 }
  0xfd   :  { %v189_v1 = vpack.c.bf16 %v187_v0, %v187_v0 }
  0xff   :  { %426 = vmatprep.mubr.bf16.mxu0 %v189_v1 }
 0x100   :  { %427 = vmatmul.mubr.bf16.vlgmr.msra.gmra.mrb[0].mxu0 %v188_v2 }
 0x1d3   :  { %v428_v7 = vpop.f32.mrb[0].mxu0 }
 0x1d4   :  { %v429_v8 = vadd.f32 %v428_v7, %v227_v4  ;;  %v430_v9 = vpop.f32.mrb[1].mxu0 }
 0x1d5   :  { %v431_v11 = vadd.f32 %v430_v9, %v231_v5  ;;  %v432_v12 = vpop.f32.mrb[2].mxu0 }
 0x1d6   :  { %v435_v14 = vmax.f32 %v429_v8, 0.0  ;;  %v433_v15 = vpop.f32.mrb[3].mxu0 }
 0x1d7   :  { %v436_v16 = vmax.f32 %v431_v11, 0.0 }
 0x1d8   :  { %v449_v17 = vmul.f32 %v442_v10, %v435_v14 }
 0x1d9   :  { %v450_v18 = vmul.f32 %v446_v13, %v436_v16 }
 0x1db   :  { %v451_v19 = vadd.f32 %v450_v18, %v449_v17 }
 0x1dd   :  { %452 = vadd.xlane.f32.xlu0 %v451_v19 }
 0x26a   :  { %v453_v21 = vpop.xlane.xlu0 %452 }
 0x26b   :  { %v456_v22 = vadd.f32 %v455_v20, %v453_v21 }
 0x26d   :  { %458 = vst.msk [vmem:[%s683_s9] sm:$0xff] %vm457_vm4, %v456_v22 }
 0x26e   :  { %463 = vsyncpa [#allocation4], 1 }

</bundles_post_ra>
